<compile_context>
chip_gen: v7x
topology: tpu7x:2x2x1
jax: 0.10.0
libtpu: 0.0.40
codegen_flags: <defaults>
</compile_context>

<pallas_src>
import jax
import jax.numpy as jnp
from jax.experimental import pallas as pl
from jax.experimental.pallas import tpu as pltpu


def _round_up(a, b):
    return ((a + b - 1) // b) * b


def _pad_rows(a, rows):
    if a.shape[0] == rows:
        return a
    return jnp.pad(a, ((0, rows - a.shape[0]), (0, 0)))


# ---------------------------------------------------------------------------
# Pass 1: input statistics on row-packed x (lane-dense, 128-wide tiles).
#   colsum[c]     += sum_r t[r, c]
#   moment[c1,c2] += sum_r t[r, c1] * t[r, c2]     (packed Gram matrix)
# Resident accumulators -> grid axis must stay "arbitrary" (serial).
# ---------------------------------------------------------------------------
def stats_kernel(x_ref, sum_ref, mom_ref):
    @pl.when(pl.program_id(0) == 0)
    def _():
        sum_ref[...] = jnp.zeros_like(sum_ref)
        mom_ref[...] = jnp.zeros_like(mom_ref)

    t = x_ref[...]
    sum_ref[...] += jnp.sum(t, axis=0, keepdims=True)
    mom_ref[...] += jnp.dot(t.T, t, preferred_element_type=jnp.float32)


# ---------------------------------------------------------------------------
# Pass 2: fused matmul + (conv-bias + BatchNorm) affine, lane-dense output.
#   o = (x @ W_blockdiag) * scale + shift
# ---------------------------------------------------------------------------
def matmul_bn_kernel(x_ref, w_ref, scale_ref, shift_ref, o_ref):
    y = jnp.dot(x_ref[...], w_ref[...], preferred_element_type=jnp.float32)
    o_ref[...] = y * scale_ref[...] + shift_ref[...]


def transp_conv_block_3d(x, weight, bias, gamma, beta, *, eps=1e-5,
                         block_rows=1024):
    """Forward pass of TranspConvBlock3D (ConvTranspose3d k=2,s=2 + BatchNorm3d).

    x:      [N, Cin, D, H, W]     float32
    weight: [Cin, Cout, 2, 2, 2]  (PyTorch ConvTranspose3d layout)
    bias:   [Cout]
    gamma, beta: [Cout]           (BatchNorm affine params)
    returns [N, Cout, 2D, 2H, 2W]
    """
    N, Cin, D, H, W = x.shape
    Cout = weight.shape[1]
    K = Cout * 8
    M = N * D * H * W
    f32 = jnp.float32

    x_mat = jnp.transpose(x, (0, 2, 3, 4, 1)).reshape(M, Cin).astype(f32)
    w_mat = weight.reshape(Cin, K).astype(f32)          # cols ordered (co, kd, kh, kw)
    bias_col = jnp.repeat(bias.astype(f32), 8)          # (K,)

    # ------------------ pass 1: column sums + Gram matrix of x -------------
    Q = 128 // Cin if (Cin < 128 and 128 % Cin == 0) else 1   # rows packed per 128 lanes
    Cq = Q * Cin
    Mq = pl.cdiv(M, Q)
    bm1 = min(block_rows, _round_up(Mq, 8))
    Mq_pad = _round_up(Mq, bm1)
    x1 = _pad_rows(x_mat, Mq_pad * Q).reshape(Mq_pad, Cq)     # zero rows: stats unaffected

    colsum_p, moment_p = pl.pallas_call(
        stats_kernel,
        out_shape=(jax.ShapeDtypeStruct((1, Cq), f32),
                   jax.ShapeDtypeStruct((Cq, Cq), f32)),
        grid_spec=pltpu.PrefetchScalarGridSpec(
            num_scalar_prefetch=0,
            grid=(Mq_pad // bm1,),
            in_specs=[pl.BlockSpec((bm1, Cq), lambda i: (i, 0))],
            out_specs=(pl.BlockSpec((1, Cq), lambda i: (0, 0)),      # resident accumulators
                       pl.BlockSpec((Cq, Cq), lambda i: (0, 0))),
        ),
        compiler_params=pltpu.CompilerParams(
            dimension_semantics=("arbitrary",),
            vmem_limit_bytes=32 * 1024 * 1024),
    )(x1)

    # Unpack: s[c] = sum_m x[m,c];  G[c1,c2] = sum_m x[m,c1]*x[m,c2]
    s = colsum_p.reshape(Q, Cin).sum(axis=0)
    G = jnp.einsum('aibj,ab->ij',
                   moment_p.reshape(Q, Cin, Q, Cin), jnp.eye(Q, dtype=f32))

    # ---- BN batch statistics (training mode, biased variance) analytically --
    Mf = jnp.float32(M)
    count = Mf * 8.0                                   # N * 2D * 2H * 2W per channel
    sw = s @ w_mat                                     # (K,)
    sum_y = sw + Mf * bias_col
    quad = jnp.sum(w_mat * (G @ w_mat), axis=0)        # (K,)  = w_k^T G w_k
    sumsq_y = quad + 2.0 * bias_col * sw + Mf * bias_col * bias_col

    ch_sum = sum_y.reshape(Cout, 8).sum(axis=-1)
    ch_sq = sumsq_y.reshape(Cout, 8).sum(axis=-1)
    mean = ch_sum / count
    var = jnp.maximum(ch_sq / count - mean * mean, 0.0)
    inv_std = jax.lax.rsqrt(var + eps)
    scale_c = gamma.astype(f32) * inv_std
    shift_c = beta.astype(f32) + (bias.astype(f32) - mean) * scale_c   # bias folded in
    scale_col = jnp.repeat(scale_c, 8).reshape(1, K)
    shift_col = jnp.repeat(shift_c, 8).reshape(1, K)

    # ------------- pass 2: fused matmul + affine, lane-dense stores ---------
    P = 128 // K if (K < 128 and 128 % K == 0) else 1   # rows packed per 128-lane output row
    Kp = P * K
    Cp = P * Cin
    Mp = pl.cdiv(M, P)
    bm2 = min(block_rows, _round_up(Mp, 8))
    Mp_pad = _round_up(Mp, bm2)
    x2 = _pad_rows(x_mat, Mp_pad * P).reshape(Mp_pad, Cp)     # free reshape when no pad
    w2 = jnp.kron(jnp.eye(P, dtype=f32), w_mat)               # (P*Cin, P*K) block-diagonal
    scale2 = jnp.tile(scale_col, (1, P))
    shift2 = jnp.tile(shift_col, (1, P))

    y2 = pl.pallas_call(
        matmul_bn_kernel,
        out_shape=jax.ShapeDtypeStruct((Mp_pad, Kp), f32),
        grid_spec=pltpu.PrefetchScalarGridSpec(
            num_scalar_prefetch=0,
            grid=(Mp_pad // bm2,),
            in_specs=[pl.BlockSpec((bm2, Cp), lambda i: (i, 0)),
                      pl.BlockSpec((Cp, Kp), lambda i: (0, 0)),
                      pl.BlockSpec((1, Kp), lambda i: (0, 0)),
                      pl.BlockSpec((1, Kp), lambda i: (0, 0))],
            out_specs=pl.BlockSpec((bm2, Kp), lambda i: (i, 0)),
        ),
        compiler_params=pltpu.CompilerParams(
            dimension_semantics=("parallel",),       # both TCs on v7x for the heavy pass
            vmem_limit_bytes=32 * 1024 * 1024),
    )(x2, w2, scale2, shift2)

    # ---- glue: drop pad rows and scatter the 2x2x2 blocks into NCDHW -------
    y_flat = y2.reshape(Mp_pad * P, K)[:M]            # row-major unpack is metadata only
    out = y_flat.reshape(N, D, H, W, Cout, 2, 2, 2)
    out = jnp.transpose(out, (0, 4, 1, 5, 2, 6, 3, 7))   # N,Cout,D,kd,H,kh,W,kw
    return out.reshape(N, Cout, 2 * D, 2 * H, 2 * W)


def _reference(x, weight, bias, gamma, beta, eps=1e-5):
    """Pure-JAX reference: ConvTranspose3d(k=2,s=2) + training-mode BatchNorm3d."""
    N, Cin, D, H, W = x.shape
    Cout = weight.shape[1]
    y = jnp.einsum('ncdhw,coxyz->nodxhywz', x, weight,
                   precision=jax.lax.Precision.HIGHEST)
    y = y.reshape(N, Cout, 2 * D, 2 * H, 2 * W) + bias[None, :, None, None, None]
    mean = y.mean(axis=(0, 2, 3, 4), keepdims=True)
    var = ((y - mean) ** 2).mean(axis=(0, 2, 3, 4), keepdims=True)
    y = (y - mean) * jax.lax.rsqrt(var + eps)
    return y * gamma[None, :, None, None, None] + beta[None, :, None, None, None]


if __name__ == "__main__":
    key = jax.random.PRNGKey(0)
    k_x, k_w, k_b, k_g, k_be = jax.random.split(key, 5)

    N, Cin, Cout = 2, 4, 8
    D = H = W = 8

    x = jax.random.normal(k_x, (N, Cin, D, H, W), dtype=jnp.float32)

    # Deterministic, PyTorch-like parameter init (uniform in +-1/sqrt(fan)).
    fan = Cout * 2 * 2 * 2
    bound = 1.0 / jnp.sqrt(jnp.float32(fan))
    weight = jax.random.uniform(k_w, (Cin, Cout, 2, 2, 2),
                                minval=-bound, maxval=bound, dtype=jnp.float32)
    bias = jax.random.uniform(k_b, (Cout,), minval=-bound, maxval=bound,
                              dtype=jnp.float32)
    gamma = 1.0 + 0.1 * jax.random.normal(k_g, (Cout,), dtype=jnp.float32)
    beta = 0.1 * jax.random.normal(k_be, (Cout,), dtype=jnp.float32)

    out = transp_conv_block_3d(x, weight, bias, gamma, beta)
    out = jax.block_until_ready(out)

    assert out.shape == (N, Cout, 2 * D, 2 * H, 2 * W)
    assert out.dtype == jnp.float32

    ref = jax.block_until_ready(_reference(x, weight, bias, gamma, beta))
    err = float(jnp.max(jnp.abs(out - ref)))
    assert err < 2e-3, f"max abs error vs reference: {err}"

    print("KERNEL_OK")
</pallas_src>

<mosaic_0001>
module attributes {stable_mosaic.version = 11 : i64} {
  func.func @stats_kernel(%arg0: i32, %arg1: memref<32x128xf32, #tpu.memory_space<vmem>>, %arg2: memref<1x128xf32, #tpu.memory_space<vmem>>, %arg3: memref<128x128xf32, #tpu.memory_space<vmem>>) attributes {dimension_semantics = [#tpu.dimension_semantics<arbitrary>], iteration_bounds = array<i64: 1>, scalar_prefetch = 0 : i64, scratch_operands = 0 : i64, tpu.core_type = #tpu.core_type<tc>, window_params = [{transform_indices = @transform_0, window_bounds = array<i64: 32, 128>}, {pipeline_mode = #tpu.pipeline_mode<synchronous>, transform_indices = @transform_1, window_bounds = array<i64: 1, 128>}, {pipeline_mode = #tpu.pipeline_mode<synchronous>, transform_indices = @transform_2, window_bounds = array<i64: 128, 128>}]} {
    %c0_i32 = arith.constant 0 : i32
    %0 = arith.cmpi eq, %arg0, %c0_i32 : i32
    %1 = arith.extui %0 : i1 to i32
    %c0_i32_0 = arith.constant 0 : i32
    %2 = arith.cmpi ne, %1, %c0_i32_0 : i32
    scf.if %2 {
      %cst_11 = arith.constant 0.000000e+00 : f32
      %14 = vector.broadcast %cst_11 : f32 to vector<1x128xf32>
      %c0_12 = arith.constant 0 : index
      %c0_13 = arith.constant 0 : index
      %15 = vector.load %arg2[%c0_12, %c0_13] : memref<1x128xf32, #tpu.memory_space<vmem>>, vector<1x128xf32>
      tpu.vector_store %arg2[%c0_12, %c0_13], %14 {strides = array<i32>} : memref<1x128xf32, #tpu.memory_space<vmem>>, vector<1x128xf32>,
      %cst_14 = arith.constant 0.000000e+00 : f32
      %16 = vector.broadcast %cst_14 : f32 to vector<128x128xf32>
      %c0_15 = arith.constant 0 : index
      %c0_16 = arith.constant 0 : index
      %17 = vector.load %arg3[%c0_15, %c0_16] : memref<128x128xf32, #tpu.memory_space<vmem>>, vector<128x128xf32>
      tpu.vector_store %arg3[%c0_15, %c0_16], %16 {strides = array<i32>} : memref<128x128xf32, #tpu.memory_space<vmem>>, vector<128x128xf32>,
    } else {
    }
    %c0 = arith.constant 0 : index
    %c0_1 = arith.constant 0 : index
    %3 = vector.load %arg1[%c0, %c0_1] : memref<32x128xf32, #tpu.memory_space<vmem>>, vector<32x128xf32>
    %c0_2 = arith.constant 0 : index
    %c0_3 = arith.constant 0 : index
    %4 = vector.load %arg2[%c0_2, %c0_3] : memref<1x128xf32, #tpu.memory_space<vmem>>, vector<1x128xf32>
    %cst = arith.constant dense<0.000000e+00> : vector<128xf32>
    %5 = vector.multi_reduction <add>, %3, %cst [0] : vector<32x128xf32> to vector<128xf32>
    %6 = vector.shape_cast %5 : vector<128xf32> to vector<1x128xf32>
    %7 = arith.addf %4, %6 : vector<1x128xf32>
    %c0_4 = arith.constant 0 : index
    %c0_5 = arith.constant 0 : index
    %8 = vector.load %arg2[%c0_4, %c0_5] : memref<1x128xf32, #tpu.memory_space<vmem>>, vector<1x128xf32>
    tpu.vector_store %arg2[%c0_4, %c0_5], %7 {strides = array<i32>} : memref<1x128xf32, #tpu.memory_space<vmem>>, vector<1x128xf32>,
    %c0_6 = arith.constant 0 : index
    %c0_7 = arith.constant 0 : index
    %9 = vector.load %arg3[%c0_6, %c0_7] : memref<128x128xf32, #tpu.memory_space<vmem>>, vector<128x128xf32>
    %10 = tpu.transpose %3, [1, 0] : vector<32x128xf32> -> vector<128x32xf32>
    %cst_8 = arith.constant dense<0.000000e+00> : vector<128x128xf32>
    %11 = tpu.matmul %10, %3, %cst_8 {dimension_numbers = #tpu.dot_dimension_numbers<[1], [0], [0], [1], [0, 0, 1, 1], [], []>} : vector<128x32xf32>, vector<32x128xf32>, vector<128x128xf32> -> vector<128x128xf32>
    %12 = arith.addf %9, %11 : vector<128x128xf32>
    %c0_9 = arith.constant 0 : index
    %c0_10 = arith.constant 0 : index
    %13 = vector.load %arg3[%c0_9, %c0_10] : memref<128x128xf32, #tpu.memory_space<vmem>>, vector<128x128xf32>
    tpu.vector_store %arg3[%c0_9, %c0_10], %12 {strides = array<i32>} : memref<128x128xf32, #tpu.memory_space<vmem>>, vector<128x128xf32>,
    return
  }
  func.func @transform_0(%arg0: i32) -> (i32, i32) {
    %c0_i32 = arith.constant 0 : i32
    %c0_i32_0 = arith.constant 0 : i32
    return %arg0, %c0_i32 : i32, i32
  }
  func.func @transform_1(%arg0: i32) -> (i32, i32) {
    %c0_i32 = arith.constant 0 : i32
    %c0_i32_0 = arith.constant 0 : i32
    %c0_i32_1 = arith.constant 0 : i32
    return %c0_i32, %c0_i32_0 : i32, i32
  }
  func.func @transform_2(%arg0: i32) -> (i32, i32) {
    %c0_i32 = arith.constant 0 : i32
    %c0_i32_0 = arith.constant 0 : i32
    %c0_i32_1 = arith.constant 0 : i32
    return %c0_i32, %c0_i32_0 : i32, i32
  }
}

</mosaic_0001>

<bundles_post_ra>
// kernel: tpu_custom_call.1
= control target key start
LH: loop header
LB: loop body
LE: loop exit
PB: predicated region body
PF: predicated region fallthrough
CT: control target
= control target key end

     0   :  { %8 = vsyncpa [#allocation3], 0  ;;  %s605_s0 = inlined_call_operand.hbm [shape: f32[32,128], index: 0, kind: input, shape index: {}]   ;;  %s606_s1 = inlined_call_operand.hbm [shape: f32[1,128], index: 1, kind: output, shape index: {0}]   ;;  %s607_s2 = inlined_call_operand.hbm [shape: f32[128,128], index: 2, kind: output, shape index: {1}]  }
   0x1   :  { %9 = vsyncpa [#allocation4], 0 }
   0x2   :  { %10 = vsyncpa [#allocation7], 0  ;;  %s526_s9 = smov [#allocation2]   ;;  %s454_s13 = scalar_lea.hbm %s605_s0, 512 }
   0x3   :  { %s16_s10 = sshll.u32 %s526_s9, 4  ;;  %p455_p0 = scmp.ne.s32.totalorder %s605_s0, %s454_s13  ;;  %s17_s10 = int_to_ptr.vmem [resolvable:$true] %s16_s10 }
   0x4   :  { %p458_p1 = scmp.lt.u32.totalorder %s454_s13, %s605_s0 }
   0x6   :  { %p460_p2 = pnand %p458_p1, %p455_p0 }
   0x8   :  { %463 = shalt.err (!%p460_p2)
}
   0x9   :  { %s464_s18 = scalar_lea.vmem %s17_s10, 512  ;;  %p469_p4 = scmp.lt.s32.totalorder %s17_s10, %s17_s10 }
   0xa   :  { %p465_p3 = scmp.ne.s32.totalorder %s17_s10, %s464_s18  ;;  %p470_p5 = scmp.lt.s32.totalorder %s464_s18, %s464_s18 }
   0xc   :  { %p471_p6 = por %p470_p5, %p469_p4 }
   0xe   :  { %p472_p7 = pnand %p471_p6, %p465_p3 }
  0x10   :  { %475 = shalt.err (!%p472_p7)
}
  0x11   :  { %s527_s19 = smov 128   ;;  %s528_s20 = smov 8  }
  0x12   :  { %22 = dma.hbm_to_vmem [thread:$0]  %s605_s0, 512, %s17_s10, [#allocation3], %s527_s19, %s527_s19, %s528_s20  }
  0x13   :  { %520 = dma.done.wait [#allocation3], 512  }
  0x14   :  { %521 = vsyncadd [#allocation3], 4294966784  ;;  %v47_v0 = vld [vmem:[#allocation2] sm:$0xff]  ;;  %v48_v1 = vld [vmem:[#allocation2 + $0x8] sm:$0xff]  ;;  %v529_v9 = vmov 0.0   ;;  %vm111_vm0 = vcmask 261120  }
  0x15   :  { %79 = vxpose.xlu0.b32.start [1/4] (short) %v47_v0, 128  ;;  %v52_v2 = vadd.f32 %v48_v1, %v47_v0  ;;  %v436_v3 = vpack.c.bf16 %v48_v1, %v47_v0  ;;  %v49_v4 = vld [vmem:[#allocation2 + $0x10] sm:$0xff]  ;;  %v50_v5 = vld [vmem:[#allocation2 + $0x18] sm:$0xff]  ;;  %30 = vst [vmem:[#allocation5] sm:$0x1] %v529_v9  ;;  %s530_s0 = smov [#allocation5]  }
  0x16   :  { %v440_v6 = vpack.c.bf16 %v50_v5, %v49_v4  ;;  %s343_s23 = sshll.u32 %s530_s0, 4  ;;  %s344_s23 = int_to_ptr.vmem [resolvable:$true] %s343_s23 }
  0x17   :  { %v53_v7 = vadd.f32 %v52_v2, %v49_v4  ;;  %437 = vmatprep.subr.bf16.mxu0 %v436_v3  ;;  %444 = vmatprep.subr.bf16.mxu1 %v436_v3  ;;  %s476_s24 = scalar_lea.vmem %s344_s23, 16  ;;  %s480_s25 = scalar_lea.vmem %s344_s23, 32 }
  0x18   :  { %439 = vmatpush3.bf16.msra.mxu0 %v436_v3  ;;  %446 = vmatpush3.bf16.msra.mxu1 %v436_v3  ;;  %p477_p8 = scmp.ne.s32.totalorder %s344_s23, %s476_s24  ;;  %p481_p9 = scmp.lt.s32.totalorder %s344_s23, %s344_s23 }
  0x19   :  { %80 = vxpose.xlu0.b32.cont [2/4] (short) %v48_v1, 128  ;;  %v54_v8 = vadd.f32 %v53_v7, %v50_v5  ;;  %441 = vmatprep.subr.bf16.mxu0 %v440_v6  ;;  %p482_p10 = scmp.lt.s32.totalorder %s480_s25, %s476_s24 }
  0x1a   :  { %445 = vmatprep.subr.bf16.mxu1 %v440_v6 }
  0x1b   :  { %v55_v26 = vrot.slane %v54_v8, 4  ;;  %p483_p11 = por %p482_p10, %p481_p9 }
  0x1c   :  { %443 = vmatpush3.bf16.msra.mxu0 %v440_v6  ;;  %447 = vmatpush3.bf16.msra.mxu1 %v440_v6  ;;  %v51_v32 = vld [vmem:[#allocation5] sm:$0x1] }
  0x1d   :  { %81 = vxpose.xlu0.b32.cont [3/4] (short) %v49_v4, 128  ;;  %v56_v27 = vadd.f32 %v55_v26, %v54_v8  ;;  %p484_p12 = pnand %p483_p11, %p477_p8 }
  0x1f   :  { %v57_v28 = vrot.slane %v56_v27, 2 }
  0x21   :  { %82 = vxpose.xlu0.b32.end [4/4] (short) %v50_v5, 128  ;;  %v58_v29 = vadd.f32 %v57_v28, %v56_v27 }
  0x23   :  { %v59_v30 = vrot.slane %v58_v29, 1 }
  0x25   :  { %v60_v31 = vadd.f32 %v59_v30, %v58_v29 }
  0x27   :  { %v61_v33 = vadd.f32 %v60_v31, %v51_v32 }
  0x29   :  { %62 = vst [vmem:[#allocation5] sm:$0x1] %v61_v33 }
  0x95   :  { %v95_v10 = vpop.trf.xlu0 }
  0x96   :  { %412 = vmatprep.mubr.msk.f32.mxu0 %vm111_vm0, %v95_v10 }
  0x99   :  { %v96_v11 = vpop.trf.xlu0 }
  0x9a   :  { %413 = vmatmul.mubr.msk.f32.vlgmr.msra.gmra.mrb[0].mxu0 %vm111_vm0, %v96_v11 }
  0x9d   :  { %v97_v12 = vpop.trf.xlu0 }
  0x9e   :  { %415 = vmatprep.mubr.msk.f32.mxu0 %vm111_vm0, %v97_v12 }
  0xa1   :  { %v98_v13 = vpop.trf.xlu0 }
  0xa2   :  { %416 = vmatmul.mubr.msk.f32.gmra.mrb[2].mxu0 %vm111_vm0, %v98_v13 }
  0xa5   :  { %v99_v14 = vpop.trf.xlu0 }
  0xa6   :  { %418 = vmatprep.mubr.msk.f32.mxu0 %vm111_vm0, %v99_v14 }
  0xa9   :  { %v100_v15 = vpop.trf.xlu0 }
  0xaa   :  { %419 = vmatmul.mubr.msk.f32.gmra.mrb[4].mxu0 %vm111_vm0, %v100_v15 }
  0xad   :  { %v101_v16 = vpop.trf.xlu0 }
  0xae   :  { %421 = vmatprep.mubr.msk.f32.mxu0 %vm111_vm0, %v101_v16 }
  0xb1   :  { %v102_v17 = vpop.trf.xlu0 }
  0xb2   :  { %422 = vmatmul.mubr.msk.f32.gmra.mrb[6].mxu0 %vm111_vm0, %v102_v17 }
  0xb5   :  { %v103_v18 = vpop.trf.xlu0 }
  0xb6   :  { %424 = vmatprep.mubr.msk.f32.mxu1 %vm111_vm0, %v103_v18 }
  0xb9   :  { %v104_v19 = vpop.trf.xlu0 }
  0xba   :  { %425 = vmatmul.mubr.msk.f32.vlgmr.msra.gmra.mrb[0].mxu1 %vm111_vm0, %v104_v19 }
  0xbd   :  { %v105_v20 = vpop.trf.xlu0 }
  0xbe   :  { %427 = vmatprep.mubr.msk.f32.mxu1 %vm111_vm0, %v105_v20 }
  0xc1   :  { %v106_v21 = vpop.trf.xlu0 }
  0xc2   :  { %428 = vmatmul.mubr.msk.f32.gmra.mrb[2].mxu1 %vm111_vm0, %v106_v21 }
  0xc5   :  { %v107_v22 = vpop.trf.xlu0 }
  0xc6   :  { %430 = vmatprep.mubr.msk.f32.mxu1 %vm111_vm0, %v107_v22 }
  0xc9   :  { %v108_v23 = vpop.trf.xlu0 }
  0xca   :  { %431 = vmatmul.mubr.msk.f32.gmra.mrb[4].mxu1 %vm111_vm0, %v108_v23 }
  0xcd   :  { %v109_v24 = vpop.trf.xlu0 }
  0xce   :  { %433 = vmatprep.mubr.msk.f32.mxu1 %vm111_vm0, %v109_v24 }
  0xd1   :  { %v110_v25 = vpop.trf.xlu0 }
  0xd2   :  { %434 = vmatmul.mubr.msk.f32.gmra.mrb[6].mxu1 %vm111_vm0, %v110_v25 }
  0xd3   :  { %487 = shalt.err (!%p484_p12)
}
  0xd4   :  { %s488_s28 = scalar_lea.hbm %s606_s1, 16 }
  0xd5   :  { %p489_p13 = scmp.ne.s32.totalorder %s606_s1, %s488_s28  ;;  %p492_p0 = scmp.lt.u32.totalorder %s488_s28, %s606_s1 }
  0xd7   :  { %p494_p1 = pnand %p492_p0, %p489_p13 }
  0xd9   :  { %497 = shalt.err (!%p494_p1)
}
  0xda   :  { %346 = dma.vmem_to_hbm [thread:$0]  %s344_s23, 16, %s606_s1, [#allocation4]  }
  0xdb   :  { %s531_s1 = smov [#allocation6]  }
  0xdc   :  { %s352_s7 = sshll.u32 %s531_s1, 4  ;;  %s353_s7 = int_to_ptr.vmem [resolvable:$true] %s352_s7 }
  0xdd   :  { %s498_s8 = scalar_lea.vmem %s353_s7, 2048  ;;  %p503_p3 = scmp.lt.s32.totalorder %s353_s7, %s353_s7 }
  0xde   :  { %p499_p2 = scmp.ne.s32.totalorder %s353_s7, %s498_s8  ;;  %p504_p4 = scmp.lt.s32.totalorder %s498_s8, %s498_s8 }
  0xe0   :  { %p505_p5 = por %p504_p4, %p503_p3 }
  0xe2   :  { %p506_p6 = pnand %p505_p5, %p499_p2 }
 0x16d   :  { %v414_v34 = vpop.f32.mrb[0].mxu0 }
 0x16e   :  { %v226_v35 = vpop.f32.mrb[1].mxu0  ;;  %322 = vst [vmem:[#allocation6 + $0x8] sm:$0xff] %v414_v34 }
 0x16f   :  { %321 = vst [vmem:[#allocation6] sm:$0xff] %v226_v35 }
 0x175   :  { %v417_v36 = vpop.f32.mrb[2].mxu0 }
 0x176   :  { %v236_v37 = vpop.f32.mrb[3].mxu0  ;;  %324 = vst [vmem:[#allocation6 + $0x18] sm:$0xff] %v417_v36 }
 0x177   :  { %323 = vst [vmem:[#allocation6 + $0x10] sm:$0xff] %v236_v37 }
 0x17d   :  { %v420_v38 = vpop.f32.mrb[4].mxu0 }
 0x17e   :  { %v246_v39 = vpop.f32.mrb[5].mxu0  ;;  %326 = vst [vmem:[#allocation6 + $0x28] sm:$0xff] %v420_v38 }
 0x17f   :  { %325 = vst [vmem:[#allocation6 + $0x20] sm:$0xff] %v246_v39 }
 0x185   :  { %v423_v40 = vpop.f32.mrb[6].mxu0 }
 0x186   :  { %v256_v41 = vpop.f32.mrb[7].mxu0  ;;  %328 = vst [vmem:[#allocation6 + $0x38] sm:$0xff] %v423_v40 }
 0x187   :  { %327 = vst [vmem:[#allocation6 + $0x30] sm:$0xff] %v256_v41 }
 0x18d   :  { %v426_v42 = vpop.f32.mrb[0].mxu1 }
 0x18e   :  { %v266_v43 = vpop.f32.mrb[1].mxu1  ;;  %330 = vst [vmem:[#allocation6 + $0x48] sm:$0xff] %v426_v42 }
 0x18f   :  { %329 = vst [vmem:[#allocation6 + $0x40] sm:$0xff] %v266_v43 }
 0x195   :  { %v429_v44 = vpop.f32.mrb[2].mxu1 }
 0x196   :  { %v276_v45 = vpop.f32.mrb[3].mxu1  ;;  %332 = vst [vmem:[#allocation6 + $0x58] sm:$0xff] %v429_v44 }
 0x197   :  { %331 = vst [vmem:[#allocation6 + $0x50] sm:$0xff] %v276_v45 }
 0x19d   :  { %v432_v46 = vpop.f32.mrb[4].mxu1 }
 0x19e   :  { %v286_v47 = vpop.f32.mrb[5].mxu1  ;;  %334 = vst [vmem:[#allocation6 + $0x68] sm:$0xff] %v432_v46 }
 0x19f   :  { %333 = vst [vmem:[#allocation6 + $0x60] sm:$0xff] %v286_v47 }
 0x1a5   :  { %v435_v48 = vpop.f32.mrb[6].mxu1 }
 0x1a6   :  { %v296_v49 = vpop.f32.mrb[7].mxu1  ;;  %336 = vst [vmem:[#allocation6 + $0x78] sm:$0xff] %v435_v48 }
 0x1a7   :  { %335 = vst [vmem:[#allocation6 + $0x70] sm:$0xff] %v296_v49 }
 0x1a8   :  { %509 = shalt.err (!%p506_p6)
}
 0x1a9   :  { %s510_s11 = scalar_lea.hbm %s607_s2, 2048 }
 0x1aa   :  { %p511_p7 = scmp.ne.s32.totalorder %s607_s2, %s510_s11  ;;  %p514_p8 = scmp.lt.u32.totalorder %s510_s11, %s607_s2 }
 0x1ac   :  { %p516_p9 = pnand %p514_p8, %p511_p7 }
 0x1ae   :  { %519 = shalt.err (!%p516_p9)
}
 0x1af   :  { %358 = dma.vmem_to_hbm [thread:$0]  %s353_s7, 2048, %s607_s2, [#allocation7], %s527_s19, %s527_s19, %s528_s20  }
 0x1b0   :  { %522 = dma.done.wait [#allocation4], 16  }
 0x1b1   :  { %523 = vsyncadd [#allocation4], 4294967280 }
 0x1b2   :  { %524 = dma.done.wait [#allocation7], 2048  }
 0x1b3   :  { %525 = vsyncadd [#allocation7], 4294965248 }
 0x1b4   :  { %365 = vsyncpa [#allocation3], 1 }
 0x1b5   :  { %366 = vsyncpa [#allocation4], 1 }
 0x1b6   :  { %367 = vsyncpa [#allocation7], 1 }

</bundles_post_ra>
